<compile_context>
chip_gen: v7x
topology: tpu7x:2x2x1
jax: 0.10.0
libtpu: 0.0.40
codegen_flags: <defaults>
</compile_context>

<pallas_src>
import jax
import jax.numpy as jnp
from jax import lax
from jax.experimental import pallas as pl
from jax.experimental.pallas import tpu as pltpu

LANES = 128  # TPU lane width; last dim of all VMEM tiles is padded to this


def _make_fused_kernel(N, Cin, Cout, Hp, K, KP, R):
    """Kernel specialized on static shapes (loops below are Python-unrolled)."""

    def kernel(xp_ref, cw_ref, cb_ref, lw_ref, lb_ref, o_ref, v1_ref):
        # xp_ref: (N, Cin, Hp, 128)  VMEM  zero-padded input (spatial + lane pad)
        # cw_ref: (Cout*Cin,)        SMEM  conv weight scalars (flattened)
        # cb_ref: (Cout,)            SMEM  conv bias scalars
        # lw_ref: (KP, 128)          VMEM  zero-padded linear weight
        # lb_ref: (K,)               SMEM  linear bias scalars
        # o_ref : (KP, R)            VMEM  transposed, lane-dense output, R = N*Cout*Hp
        # v1_ref: (R, 128)           VMEM  scratch for relu(conv) activation

        # --- 1x1 conv + bias + relu on the VPU (128 lanes, unmasked stores) ------
        # Hoist the Cin input tiles out of the output-channel loop: only Cin vld
        # per image; the Cout output channels are pure VALU broadcast-FMAs.
        for n in range(N):
            xs = [xp_ref[n, c] for c in range(Cin)]            # Cin x (Hp, 128)
            for o in range(Cout):
                acc = xs[0] * cw_ref[o * Cin]
                for c in range(1, Cin):
                    acc = acc + xs[c] * cw_ref[o * Cin + c]
                r0 = (n * Cout + o) * Hp                       # static, 8-aligned here
                v1_ref[r0:r0 + Hp, :] = jnp.maximum(acc + cb_ref[o], 0.0)

        # --- Linear over the (lane-padded) width + bias + relu, lane-dense out ---
        # out[k, r] = sum_w lw[k, w] * v1[r, w]; padded lin_w lanes/rows are zero.
        out = lax.dot_general(
            lw_ref[...], v1_ref[...],
            dimension_numbers=(((1,), (1,)), ((), ())),
            preferred_element_type=jnp.float32)                # (KP, R)

        # Linear bias folded as K scalar selects from SMEM (rows >= K are padding
        # and get sliced off in the wrapper); single unmasked (KP, R) store.
        row = lax.broadcasted_iota(jnp.int32, (KP, R), 0)
        bias = jnp.zeros((KP, R), jnp.float32)
        for k in range(K):
            bias = jnp.where(row == k, lb_ref[k], bias)
        o_ref[...] = jnp.maximum(out + bias, 0.0)

    return kernel


def model_forward(x, conv_w, conv_b, lin_w, lin_b):
    """Pallas implementation of Model.forward.

    x:      (N, 3, H, W)  NCHW float32   (Linear(100, 2) implies W + 2 == 100)
    conv_w: (8, 3)        Conv2d(3, 8, 1) weight squeezed from (8, 3, 1, 1)
    conv_b: (8,)
    lin_w:  (2, 100)      Linear(100, 2) weight
    lin_b:  (2,)
    returns v3: (N, 8, H+2, 2)
    """
    Nb, Cin, H, W = x.shape
    Cout = conv_w.shape[0]
    K, Win = lin_w.shape
    Hp, Wp = H + 2, W + 2
    assert Wp == Win, "padded width must equal Linear in_features (100)"
    assert Wp <= LANES
    KP = 8                                   # sublane-padded output rows
    R = Nb * Cout * Hp
    # Demo shapes give Hp % 8 == 0 and R % 128 == 0 -> all stores unmasked.
    # Other H/N stay correct (static slices just become masked stores).

    # Single combined zero-pad: conv's spatial padding=1 plus lane pad to 128.
    # Fused by XLA inside the same jit as the pallas_call.
    xp = jnp.pad(x, ((0, 0), (0, 0), (1, 1), (1, LANES - W - 1)))   # (N,Cin,Hp,128)

    # Zero-pad linear weight to (8, 128): padded rows/lanes contribute zero.
    lw_p = jnp.pad(lin_w, ((0, KP - K), (0, LANES - Win)))

    cw_flat = conv_w.reshape(Cout * Cin)     # 1-D SMEM (avoids 2-D SMEM padding)

    kernel = _make_fused_kernel(Nb, Cin, Cout, Hp, K, KP, R)

    out_t = pl.pallas_call(
        kernel,
        out_shape=jax.ShapeDtypeStruct((KP, R), jnp.float32),
        grid_spec=pltpu.PrefetchScalarGridSpec(
            num_scalar_prefetch=0,
            grid=(1,),                                        # single pipeline step
            in_specs=[
                pl.BlockSpec((Nb, Cin, Hp, LANES), lambda i: (0, 0, 0, 0)),
                pl.BlockSpec(memory_space=pltpu.MemorySpace.SMEM),   # conv_w scalars
                pl.BlockSpec(memory_space=pltpu.MemorySpace.SMEM),   # conv_b scalars
                pl.BlockSpec((KP, LANES), lambda i: (0, 0)),         # padded lin_w
                pl.BlockSpec(memory_space=pltpu.MemorySpace.SMEM),   # lin_b scalars
            ],
            out_specs=pl.BlockSpec((KP, R), lambda i: (0, 0)),
            scratch_shapes=[pltpu.VMEM((R, LANES), jnp.float32)],
        ),
        compiler_params=pltpu.CompilerParams(
            dimension_semantics=("arbitrary",)),
    )(xp, cw_flat, conv_b, lw_p, lin_b)

    # v2 = mean(v1, dim=(1,2,3)) is dead code in the PyTorch forward; not computed.
    # Slice the real K rows, tiny transpose/reshape handled by XLA inside the jit.
    return out_t[:K].T.reshape(Nb, Cout, Hp, K)


def reference_forward(x, conv_w, conv_b, lin_w, lin_b):
    xp = jnp.pad(x, ((0, 0), (0, 0), (1, 1), (1, 1)))
    v1 = jnp.maximum(
        jnp.einsum("nchw,oc->nohw", xp, conv_w) + conv_b[None, :, None, None], 0.0
    )
    v3 = jnp.maximum(jnp.einsum("nohw,kw->nohk", v1, lin_w) + lin_b, 0.0)
    return v3


if __name__ == "__main__":
    key = jax.random.PRNGKey(0)
    k1, k2, k3, k4, k5 = jax.random.split(key, 5)

    # Linear(100, 2) over the last axis requires W + 2 == 100 -> W = 98.
    N, Cin, H, W = 2, 3, 6, 98
    x = jax.random.normal(k1, (N, Cin, H, W), dtype=jnp.float32)

    conv_w = jax.random.normal(k2, (8, 3), dtype=jnp.float32) * 0.3   # Conv2d(3,8,1) weight
    conv_b = jax.random.normal(k3, (8,), dtype=jnp.float32) * 0.1
    lin_w = jax.random.normal(k4, (2, 100), dtype=jnp.float32) * 0.1  # Linear(100,2) weight
    lin_b = jax.random.normal(k5, (2,), dtype=jnp.float32) * 0.1

    out = jax.jit(model_forward)(x, conv_w, conv_b, lin_w, lin_b)
    jax.block_until_ready(out)

    ref = reference_forward(x, conv_w, conv_b, lin_w, lin_b)
    assert out.shape == (N, 8, H + 2, 2), out.shape
    assert jnp.allclose(out, ref, atol=1e-4, rtol=1e-4), float(jnp.max(jnp.abs(out - ref)))

    print("KERNEL_OK")
</pallas_src>

<mosaic_0001>
module attributes {stable_mosaic.version = 11 : i64} {
  func.func @kernel(%arg0: i32, %arg1: memref<2x3x8x128xf32, #tpu.memory_space<vmem>>, %arg2: memref<24xf32, #tpu.memory_space<smem>>, %arg3: memref<8xf32, #tpu.memory_space<smem>>, %arg4: memref<8x128xf32, #tpu.memory_space<vmem>>, %arg5: memref<2xf32, #tpu.memory_space<smem>>, %arg6: memref<8x128xf32, #tpu.memory_space<vmem>>, %arg7: memref<128x128xf32, #tpu.memory_space<vmem>>) attributes {dimension_semantics = [#tpu.dimension_semantics<arbitrary>], iteration_bounds = array<i64: 1>, scalar_prefetch = 0 : i64, scratch_operands = 1 : i64, tpu.core_type = #tpu.core_type<tc>, window_params = [{pipeline_mode = #tpu.pipeline_mode<synchronous>, transform_indices = @transform_0, window_bounds = array<i64: 2, 3, 8, 128>}, {transform_indices = @transform_1, window_bounds = array<i64: 24>}, {transform_indices = @transform_2, window_bounds = array<i64: 8>}, {pipeline_mode = #tpu.pipeline_mode<synchronous>, transform_indices = @transform_3, window_bounds = array<i64: 8, 128>}, {transform_indices = @transform_4, window_bounds = array<i64: 2>}, {pipeline_mode = #tpu.pipeline_mode<synchronous>, transform_indices = @transform_5, window_bounds = array<i64: 8, 128>}]} {
    %c0 = arith.constant 0 : index
    %c0_0 = arith.constant 0 : index
    %c0_1 = arith.constant 0 : index
    %c0_2 = arith.constant 0 : index
    %0 = vector.load %arg1[%c0, %c0_0, %c0_1, %c0_2] : memref<2x3x8x128xf32, #tpu.memory_space<vmem>>, vector<1x1x8x128xf32>
    %1 = vector.shape_cast %0 : vector<1x1x8x128xf32> to vector<8x128xf32>
    %c0_3 = arith.constant 0 : index
    %c1 = arith.constant 1 : index
    %c0_4 = arith.constant 0 : index
    %c0_5 = arith.constant 0 : index
    %2 = vector.load %arg1[%c0_3, %c1, %c0_4, %c0_5] : memref<2x3x8x128xf32, #tpu.memory_space<vmem>>, vector<1x1x8x128xf32>
    %3 = vector.shape_cast %2 : vector<1x1x8x128xf32> to vector<8x128xf32>
    %c0_6 = arith.constant 0 : index
    %c2 = arith.constant 2 : index
    %c0_7 = arith.constant 0 : index
    %c0_8 = arith.constant 0 : index
    %4 = vector.load %arg1[%c0_6, %c2, %c0_7, %c0_8] : memref<2x3x8x128xf32, #tpu.memory_space<vmem>>, vector<1x1x8x128xf32>
    %5 = vector.shape_cast %4 : vector<1x1x8x128xf32> to vector<8x128xf32>
    %c0_9 = arith.constant 0 : index
    %6 = memref.load %arg2[%c0_9] : memref<24xf32, #tpu.memory_space<smem>>
    %7 = vector.broadcast %6 : f32 to vector<8x128xf32>
    %8 = arith.mulf %1, %7 : vector<8x128xf32>
    %c1_10 = arith.constant 1 : index
    %9 = memref.load %arg2[%c1_10] : memref<24xf32, #tpu.memory_space<smem>>
    %10 = vector.broadcast %9 : f32 to vector<8x128xf32>
    %11 = arith.mulf %3, %10 : vector<8x128xf32>
    %12 = arith.addf %8, %11 : vector<8x128xf32>
    %c2_11 = arith.constant 2 : index
    %13 = memref.load %arg2[%c2_11] : memref<24xf32, #tpu.memory_space<smem>>
    %14 = vector.broadcast %13 : f32 to vector<8x128xf32>
    %15 = arith.mulf %5, %14 : vector<8x128xf32>
    %16 = arith.addf %12, %15 : vector<8x128xf32>
    %c0_12 = arith.constant 0 : index
    %17 = memref.load %arg3[%c0_12] : memref<8xf32, #tpu.memory_space<smem>>
    %18 = vector.broadcast %17 : f32 to vector<8x128xf32>
    %19 = arith.addf %16, %18 : vector<8x128xf32>
    %cst = arith.constant 0.000000e+00 : f32
    %20 = vector.broadcast %cst : f32 to vector<8x128xf32>
    %21 = arith.maximumf %19, %20 : vector<8x128xf32>
    %c0_13 = arith.constant 0 : index
    %c0_14 = arith.constant 0 : index
    %22 = vector.load %arg7[%c0_13, %c0_14] : memref<128x128xf32, #tpu.memory_space<vmem>>, vector<8x128xf32>
    tpu.vector_store %arg7[%c0_13, %c0_14], %21 {strides = array<i32>} : memref<128x128xf32, #tpu.memory_space<vmem>>, vector<8x128xf32>,
    %c3 = arith.constant 3 : index
    %23 = memref.load %arg2[%c3] : memref<24xf32, #tpu.memory_space<smem>>
    %24 = vector.broadcast %23 : f32 to vector<8x128xf32>
    %25 = arith.mulf %1, %24 : vector<8x128xf32>
    %c4 = arith.constant 4 : index
    %26 = memref.load %arg2[%c4] : memref<24xf32, #tpu.memory_space<smem>>
    %27 = vector.broadcast %26 : f32 to vector<8x128xf32>
    %28 = arith.mulf %3, %27 : vector<8x128xf32>
    %29 = arith.addf %25, %28 : vector<8x128xf32>
    %c5 = arith.constant 5 : index
    %30 = memref.load %arg2[%c5] : memref<24xf32, #tpu.memory_space<smem>>
    %31 = vector.broadcast %30 : f32 to vector<8x128xf32>
    %32 = arith.mulf %5, %31 : vector<8x128xf32>
    %33 = arith.addf %29, %32 : vector<8x128xf32>
    %c1_15 = arith.constant 1 : index
    %34 = memref.load %arg3[%c1_15] : memref<8xf32, #tpu.memory_space<smem>>
    %35 = vector.broadcast %34 : f32 to vector<8x128xf32>
    %36 = arith.addf %33, %35 : vector<8x128xf32>
    %cst_16 = arith.constant 0.000000e+00 : f32
    %37 = vector.broadcast %cst_16 : f32 to vector<8x128xf32>
    %38 = arith.maximumf %36, %37 : vector<8x128xf32>
    %c8 = arith.constant 8 : index
    %c0_17 = arith.constant 0 : index
    %39 = vector.load %arg7[%c8, %c0_17] : memref<128x128xf32, #tpu.memory_space<vmem>>, vector<8x128xf32>
    tpu.vector_store %arg7[%c8, %c0_17], %38 {strides = array<i32>} : memref<128x128xf32, #tpu.memory_space<vmem>>, vector<8x128xf32>,
    %c6 = arith.constant 6 : index
    %40 = memref.load %arg2[%c6] : memref<24xf32, #tpu.memory_space<smem>>
    %41 = vector.broadcast %40 : f32 to vector<8x128xf32>
    %42 = arith.mulf %1, %41 : vector<8x128xf32>
    %c7 = arith.constant 7 : index
    %43 = memref.load %arg2[%c7] : memref<24xf32, #tpu.memory_space<smem>>
    %44 = vector.broadcast %43 : f32 to vector<8x128xf32>
    %45 = arith.mulf %3, %44 : vector<8x128xf32>
    %46 = arith.addf %42, %45 : vector<8x128xf32>
    %c8_18 = arith.constant 8 : index
    %47 = memref.load %arg2[%c8_18] : memref<24xf32, #tpu.memory_space<smem>>
    %48 = vector.broadcast %47 : f32 to vector<8x128xf32>
    %49 = arith.mulf %5, %48 : vector<8x128xf32>
    %50 = arith.addf %46, %49 : vector<8x128xf32>
    %c2_19 = arith.constant 2 : index
    %51 = memref.load %arg3[%c2_19] : memref<8xf32, #tpu.memory_space<smem>>
    %52 = vector.broadcast %51 : f32 to vector<8x128xf32>
    %53 = arith.addf %50, %52 : vector<8x128xf32>
    %cst_20 = arith.constant 0.000000e+00 : f32
    %54 = vector.broadcast %cst_20 : f32 to vector<8x128xf32>
    %55 = arith.maximumf %53, %54 : vector<8x128xf32>
    %c16 = arith.constant 16 : index
    %c0_21 = arith.constant 0 : index
    %56 = vector.load %arg7[%c16, %c0_21] : memref<128x128xf32, #tpu.memory_space<vmem>>, vector<8x128xf32>
    tpu.vector_store %arg7[%c16, %c0_21], %55 {strides = array<i32>} : memref<128x128xf32, #tpu.memory_space<vmem>>, vector<8x128xf32>,
    %c9 = arith.constant 9 : index
    %57 = memref.load %arg2[%c9] : memref<24xf32, #tpu.memory_space<smem>>
    %58 = vector.broadcast %57 : f32 to vector<8x128xf32>
    %59 = arith.mulf %1, %58 : vector<8x128xf32>
    %c10 = arith.constant 10 : index
    %60 = memref.load %arg2[%c10] : memref<24xf32, #tpu.memory_space<smem>>
    %61 = vector.broadcast %60 : f32 to vector<8x128xf32>
    %62 = arith.mulf %3, %61 : vector<8x128xf32>
    %63 = arith.addf %59, %62 : vector<8x128xf32>
    %c11 = arith.constant 11 : index
    %64 = memref.load %arg2[%c11] : memref<24xf32, #tpu.memory_space<smem>>
    %65 = vector.broadcast %64 : f32 to vector<8x128xf32>
    %66 = arith.mulf %5, %65 : vector<8x128xf32>
    %67 = arith.addf %63, %66 : vector<8x128xf32>
    %c3_22 = arith.constant 3 : index
    %68 = memref.load %arg3[%c3_22] : memref<8xf32, #tpu.memory_space<smem>>
    %69 = vector.broadcast %68 : f32 to vector<8x128xf32>
    %70 = arith.addf %67, %69 : vector<8x128xf32>
    %cst_23 = arith.constant 0.000000e+00 : f32
    %71 = vector.broadcast %cst_23 : f32 to vector<8x128xf32>
    %72 = arith.maximumf %70, %71 : vector<8x128xf32>
    %c24 = arith.constant 24 : index
    %c0_24 = arith.constant 0 : index
    %73 = vector.load %arg7[%c24, %c0_24] : memref<128x128xf32, #tpu.memory_space<vmem>>, vector<8x128xf32>
    tpu.vector_store %arg7[%c24, %c0_24], %72 {strides = array<i32>} : memref<128x128xf32, #tpu.memory_space<vmem>>, vector<8x128xf32>,
    %c12 = arith.constant 12 : index
    %74 = memref.load %arg2[%c12] : memref<24xf32, #tpu.memory_space<smem>>
    %75 = vector.broadcast %74 : f32 to vector<8x128xf32>
    %76 = arith.mulf %1, %75 : vector<8x128xf32>
    %c13 = arith.constant 13 : index
    %77 = memref.load %arg2[%c13] : memref<24xf32, #tpu.memory_space<smem>>
    %78 = vector.broadcast %77 : f32 to vector<8x128xf32>
    %79 = arith.mulf %3, %78 : vector<8x128xf32>
    %80 = arith.addf %76, %79 : vector<8x128xf32>
    %c14 = arith.constant 14 : index
    %81 = memref.load %arg2[%c14] : memref<24xf32, #tpu.memory_space<smem>>
    %82 = vector.broadcast %81 : f32 to vector<8x128xf32>
    %83 = arith.mulf %5, %82 : vector<8x128xf32>
    %84 = arith.addf %80, %83 : vector<8x128xf32>
    %c4_25 = arith.constant 4 : index
    %85 = memref.load %arg3[%c4_25] : memref<8xf32, #tpu.memory_space<smem>>
    %86 = vector.broadcast %85 : f32 to vector<8x128xf32>
    %87 = arith.addf %84, %86 : vector<8x128xf32>
    %cst_26 = arith.constant 0.000000e+00 : f32
    %88 = vector.broadcast %cst_26 : f32 to vector<8x128xf32>
    %89 = arith.maximumf %87, %88 : vector<8x128xf32>
    %c32 = arith.constant 32 : index
    %c0_27 = arith.constant 0 : index
    %90 = vector.load %arg7[%c32, %c0_27] : memref<128x128xf32, #tpu.memory_space<vmem>>, vector<8x128xf32>
    tpu.vector_store %arg7[%c32, %c0_27], %89 {strides = array<i32>} : memref<128x128xf32, #tpu.memory_space<vmem>>, vector<8x128xf32>,
    %c15 = arith.constant 15 : index
    %91 = memref.load %arg2[%c15] : memref<24xf32, #tpu.memory_space<smem>>
    %92 = vector.broadcast %91 : f32 to vector<8x128xf32>
    %93 = arith.mulf %1, %92 : vector<8x128xf32>
    %c16_28 = arith.constant 16 : index
    %94 = memref.load %arg2[%c16_28] : memref<24xf32, #tpu.memory_space<smem>>
    %95 = vector.broadcast %94 : f32 to vector<8x128xf32>
    %96 = arith.mulf %3, %95 : vector<8x128xf32>
    %97 = arith.addf %93, %96 : vector<8x128xf32>
    %c17 = arith.constant 17 : index
    %98 = memref.load %arg2[%c17] : memref<24xf32, #tpu.memory_space<smem>>
    %99 = vector.broadcast %98 : f32 to vector<8x128xf32>
    %100 = arith.mulf %5, %99 : vector<8x128xf32>
    %101 = arith.addf %97, %100 : vector<8x128xf32>
    %c5_29 = arith.constant 5 : index
    %102 = memref.load %arg3[%c5_29] : memref<8xf32, #tpu.memory_space<smem>>
    %103 = vector.broadcast %102 : f32 to vector<8x128xf32>
    %104 = arith.addf %101, %103 : vector<8x128xf32>
    %cst_30 = arith.constant 0.000000e+00 : f32
    %105 = vector.broadcast %cst_30 : f32 to vector<8x128xf32>
    %106 = arith.maximumf %104, %105 : vector<8x128xf32>
    %c40 = arith.constant 40 : index
    %c0_31 = arith.constant 0 : index
    %107 = vector.load %arg7[%c40, %c0_31] : memref<128x128xf32, #tpu.memory_space<vmem>>, vector<8x128xf32>
    tpu.vector_store %arg7[%c40, %c0_31], %106 {strides = array<i32>} : memref<128x128xf32, #tpu.memory_space<vmem>>, vector<8x128xf32>,
    %c18 = arith.constant 18 : index
    %108 = memref.load %arg2[%c18] : memref<24xf32, #tpu.memory_space<smem>>
    %109 = vector.broadcast %108 : f32 to vector<8x128xf32>
    %110 = arith.mulf %1, %109 : vector<8x128xf32>
    %c19 = arith.constant 19 : index
    %111 = memref.load %arg2[%c19] : memref<24xf32, #tpu.memory_space<smem>>
    %112 = vector.broadcast %111 : f32 to vector<8x128xf32>
    %113 = arith.mulf %3, %112 : vector<8x128xf32>
    %114 = arith.addf %110, %113 : vector<8x128xf32>
    %c20 = arith.constant 20 : index
    %115 = memref.load %arg2[%c20] : memref<24xf32, #tpu.memory_space<smem>>
    %116 = vector.broadcast %115 : f32 to vector<8x128xf32>
    %117 = arith.mulf %5, %116 : vector<8x128xf32>
    %118 = arith.addf %114, %117 : vector<8x128xf32>
    %c6_32 = arith.constant 6 : index
    %119 = memref.load %arg3[%c6_32] : memref<8xf32, #tpu.memory_space<smem>>
    %120 = vector.broadcast %119 : f32 to vector<8x128xf32>
    %121 = arith.addf %118, %120 : vector<8x128xf32>
    %cst_33 = arith.constant 0.000000e+00 : f32
    %122 = vector.broadcast %cst_33 : f32 to vector<8x128xf32>
    %123 = arith.maximumf %121, %122 : vector<8x128xf32>
    %c48 = arith.constant 48 : index
    %c0_34 = arith.constant 0 : index
    %124 = vector.load %arg7[%c48, %c0_34] : memref<128x128xf32, #tpu.memory_space<vmem>>, vector<8x128xf32>
    tpu.vector_store %arg7[%c48, %c0_34], %123 {strides = array<i32>} : memref<128x128xf32, #tpu.memory_space<vmem>>, vector<8x128xf32>,
    %c21 = arith.constant 21 : index
    %125 = memref.load %arg2[%c21] : memref<24xf32, #tpu.memory_space<smem>>
    %126 = vector.broadcast %125 : f32 to vector<8x128xf32>
    %127 = arith.mulf %1, %126 : vector<8x128xf32>
    %c22 = arith.constant 22 : index
    %128 = memref.load %arg2[%c22] : memref<24xf32, #tpu.memory_space<smem>>
    %129 = vector.broadcast %128 : f32 to vector<8x128xf32>
    %130 = arith.mulf %3, %129 : vector<8x128xf32>
    %131 = arith.addf %127, %130 : vector<8x128xf32>
    %c23 = arith.constant 23 : index
    %132 = memref.load %arg2[%c23] : memref<24xf32, #tpu.memory_space<smem>>
    %133 = vector.broadcast %132 : f32 to vector<8x128xf32>
    %134 = arith.mulf %5, %133 : vector<8x128xf32>
    %135 = arith.addf %131, %134 : vector<8x128xf32>
    %c7_35 = arith.constant 7 : index
    %136 = memref.load %arg3[%c7_35] : memref<8xf32, #tpu.memory_space<smem>>
    %137 = vector.broadcast %136 : f32 to vector<8x128xf32>
    %138 = arith.addf %135, %137 : vector<8x128xf32>
    %cst_36 = arith.constant 0.000000e+00 : f32
    %139 = vector.broadcast %cst_36 : f32 to vector<8x128xf32>
    %140 = arith.maximumf %138, %139 : vector<8x128xf32>
    %c56 = arith.constant 56 : index
    %c0_37 = arith.constant 0 : index
    %141 = vector.load %arg7[%c56, %c0_37] : memref<128x128xf32, #tpu.memory_space<vmem>>, vector<8x128xf32>
    tpu.vector_store %arg7[%c56, %c0_37], %140 {strides = array<i32>} : memref<128x128xf32, #tpu.memory_space<vmem>>, vector<8x128xf32>,
    %c1_38 = arith.constant 1 : index
    %c0_39 = arith.constant 0 : index
    %c0_40 = arith.constant 0 : index
    %c0_41 = arith.constant 0 : index
    %142 = vector.load %arg1[%c1_38, %c0_39, %c0_40, %c0_41] : memref<2x3x8x128xf32, #tpu.memory_space<vmem>>, vector<1x1x8x128xf32>
    %143 = vector.shape_cast %142 : vector<1x1x8x128xf32> to vector<8x128xf32>
    %c1_42 = arith.constant 1 : index
    %c1_43 = arith.constant 1 : index
    %c0_44 = arith.constant 0 : index
    %c0_45 = arith.constant 0 : index
    %144 = vector.load %arg1[%c1_42, %c1_43, %c0_44, %c0_45] : memref<2x3x8x128xf32, #tpu.memory_space<vmem>>, vector<1x1x8x128xf32>
    %145 = vector.shape_cast %144 : vector<1x1x8x128xf32> to vector<8x128xf32>
    %c1_46 = arith.constant 1 : index
    %c2_47 = arith.constant 2 : index
    %c0_48 = arith.constant 0 : index
    %c0_49 = arith.constant 0 : index
    %146 = vector.load %arg1[%c1_46, %c2_47, %c0_48, %c0_49] : memref<2x3x8x128xf32, #tpu.memory_space<vmem>>, vector<1x1x8x128xf32>
    %147 = vector.shape_cast %146 : vector<1x1x8x128xf32> to vector<8x128xf32>
    %c0_50 = arith.constant 0 : index
    %148 = memref.load %arg2[%c0_50] : memref<24xf32, #tpu.memory_space<smem>>
    %149 = vector.broadcast %148 : f32 to vector<8x128xf32>
    %150 = arith.mulf %143, %149 : vector<8x128xf32>
    %c1_51 = arith.constant 1 : index
    %151 = memref.load %arg2[%c1_51] : memref<24xf32, #tpu.memory_space<smem>>
    %152 = vector.broadcast %151 : f32 to vector<8x128xf32>
    %153 = arith.mulf %145, %152 : vector<8x128xf32>
    %154 = arith.addf %150, %153 : vector<8x128xf32>
    %c2_52 = arith.constant 2 : index
    %155 = memref.load %arg2[%c2_52] : memref<24xf32, #tpu.memory_space<smem>>
    %156 = vector.broadcast %155 : f32 to vector<8x128xf32>
    %157 = arith.mulf %147, %156 : vector<8x128xf32>
    %158 = arith.addf %154, %157 : vector<8x128xf32>
    %c0_53 = arith.constant 0 : index
    %159 = memref.load %arg3[%c0_53] : memref<8xf32, #tpu.memory_space<smem>>
    %160 = vector.broadcast %159 : f32 to vector<8x128xf32>
    %161 = arith.addf %158, %160 : vector<8x128xf32>
    %cst_54 = arith.constant 0.000000e+00 : f32
    %162 = vector.broadcast %cst_54 : f32 to vector<8x128xf32>
    %163 = arith.maximumf %161, %162 : vector<8x128xf32>
    %c64 = arith.constant 64 : index
    %c0_55 = arith.constant 0 : index
    %164 = vector.load %arg7[%c64, %c0_55] : memref<128x128xf32, #tpu.memory_space<vmem>>, vector<8x128xf32>
    tpu.vector_store %arg7[%c64, %c0_55], %163 {strides = array<i32>} : memref<128x128xf32, #tpu.memory_space<vmem>>, vector<8x128xf32>,
    %c3_56 = arith.constant 3 : index
    %165 = memref.load %arg2[%c3_56] : memref<24xf32, #tpu.memory_space<smem>>
    %166 = vector.broadcast %165 : f32 to vector<8x128xf32>
    %167 = arith.mulf %143, %166 : vector<8x128xf32>
    %c4_57 = arith.constant 4 : index
    %168 = memref.load %arg2[%c4_57] : memref<24xf32, #tpu.memory_space<smem>>
    %169 = vector.broadcast %168 : f32 to vector<8x128xf32>
    %170 = arith.mulf %145, %169 : vector<8x128xf32>
    %171 = arith.addf %167, %170 : vector<8x128xf32>
    %c5_58 = arith.constant 5 : index
    %172 = memref.load %arg2[%c5_58] : memref<24xf32, #tpu.memory_space<smem>>
    %173 = vector.broadcast %172 : f32 to vector<8x128xf32>
    %174 = arith.mulf %147, %173 : vector<8x128xf32>
    %175 = arith.addf %171, %174 : vector<8x128xf32>
    %c1_59 = arith.constant 1 : index
    %176 = memref.load %arg3[%c1_59] : memref<8xf32, #tpu.memory_space<smem>>
    %177 = vector.broadcast %176 : f32 to vector<8x128xf32>
    %178 = arith.addf %175, %177 : vector<8x128xf32>
    %cst_60 = arith.constant 0.000000e+00 : f32
    %179 = vector.broadcast %cst_60 : f32 to vector<8x128xf32>
    %180 = arith.maximumf %178, %179 : vector<8x128xf32>
    %c72 = arith.constant 72 : index
    %c0_61 = arith.constant 0 : index
    %181 = vector.load %arg7[%c72, %c0_61] : memref<128x128xf32, #tpu.memory_space<vmem>>, vector<8x128xf32>
    tpu.vector_store %arg7[%c72, %c0_61], %180 {strides = array<i32>} : memref<128x128xf32, #tpu.memory_space<vmem>>, vector<8x128xf32>,
    %c6_62 = arith.constant 6 : index
    %182 = memref.load %arg2[%c6_62] : memref<24xf32, #tpu.memory_space<smem>>
    %183 = vector.broadcast %182 : f32 to vector<8x128xf32>
    %184 = arith.mulf %143, %183 : vector<8x128xf32>
    %c7_63 = arith.constant 7 : index
    %185 = memref.load %arg2[%c7_63] : memref<24xf32, #tpu.memory_space<smem>>
    %186 = vector.broadcast %185 : f32 to vector<8x128xf32>
    %187 = arith.mulf %145, %186 : vector<8x128xf32>
    %188 = arith.addf %184, %187 : vector<8x128xf32>
    %c8_64 = arith.constant 8 : index
    %189 = memref.load %arg2[%c8_64] : memref<24xf32, #tpu.memory_space<smem>>
    %190 = vector.broadcast %189 : f32 to vector<8x128xf32>
    %191 = arith.mulf %147, %190 : vector<8x128xf32>
    %192 = arith.addf %188, %191 : vector<8x128xf32>
    %c2_65 = arith.constant 2 : index
    %193 = memref.load %arg3[%c2_65] : memref<8xf32, #tpu.memory_space<smem>>
    %194 = vector.broadcast %193 : f32 to vector<8x128xf32>
    %195 = arith.addf %192, %194 : vector<8x128xf32>
    %cst_66 = arith.constant 0.000000e+00 : f32
    %196 = vector.broadcast %cst_66 : f32 to vector<8x128xf32>
    %197 = arith.maximumf %195, %196 : vector<8x128xf32>
    %c80 = arith.constant 80 : index
    %c0_67 = arith.constant 0 : index
    %198 = vector.load %arg7[%c80, %c0_67] : memref<128x128xf32, #tpu.memory_space<vmem>>, vector<8x128xf32>
    tpu.vector_store %arg7[%c80, %c0_67], %197 {strides = array<i32>} : memref<128x128xf32, #tpu.memory_space<vmem>>, vector<8x128xf32>,
    %c9_68 = arith.constant 9 : index
    %199 = memref.load %arg2[%c9_68] : memref<24xf32, #tpu.memory_space<smem>>
    %200 = vector.broadcast %199 : f32 to vector<8x128xf32>
    %201 = arith.mulf %143, %200 : vector<8x128xf32>
    %c10_69 = arith.constant 10 : index
    %202 = memref.load %arg2[%c10_69] : memref<24xf32, #tpu.memory_space<smem>>
    %203 = vector.broadcast %202 : f32 to vector<8x128xf32>
    %204 = arith.mulf %145, %203 : vector<8x128xf32>
    %205 = arith.addf %201, %204 : vector<8x128xf32>
    %c11_70 = arith.constant 11 : index
    %206 = memref.load %arg2[%c11_70] : memref<24xf32, #tpu.memory_space<smem>>
    %207 = vector.broadcast %206 : f32 to vector<8x128xf32>
    %208 = arith.mulf %147, %207 : vector<8x128xf32>
    %209 = arith.addf %205, %208 : vector<8x128xf32>
    %c3_71 = arith.constant 3 : index
    %210 = memref.load %arg3[%c3_71] : memref<8xf32, #tpu.memory_space<smem>>
    %211 = vector.broadcast %210 : f32 to vector<8x128xf32>
    %212 = arith.addf %209, %211 : vector<8x128xf32>
    %cst_72 = arith.constant 0.000000e+00 : f32
    %213 = vector.broadcast %cst_72 : f32 to vector<8x128xf32>
    %214 = arith.maximumf %212, %213 : vector<8x128xf32>
    %c88 = arith.constant 88 : index
    %c0_73 = arith.constant 0 : index
    %215 = vector.load %arg7[%c88, %c0_73] : memref<128x128xf32, #tpu.memory_space<vmem>>, vector<8x128xf32>
    tpu.vector_store %arg7[%c88, %c0_73], %214 {strides = array<i32>} : memref<128x128xf32, #tpu.memory_space<vmem>>, vector<8x128xf32>,
    %c12_74 = arith.constant 12 : index
    %216 = memref.load %arg2[%c12_74] : memref<24xf32, #tpu.memory_space<smem>>
    %217 = vector.broadcast %216 : f32 to vector<8x128xf32>
    %218 = arith.mulf %143, %217 : vector<8x128xf32>
    %c13_75 = arith.constant 13 : index
    %219 = memref.load %arg2[%c13_75] : memref<24xf32, #tpu.memory_space<smem>>
    %220 = vector.broadcast %219 : f32 to vector<8x128xf32>
    %221 = arith.mulf %145, %220 : vector<8x128xf32>
    %222 = arith.addf %218, %221 : vector<8x128xf32>
    %c14_76 = arith.constant 14 : index
    %223 = memref.load %arg2[%c14_76] : memref<24xf32, #tpu.memory_space<smem>>
    %224 = vector.broadcast %223 : f32 to vector<8x128xf32>
    %225 = arith.mulf %147, %224 : vector<8x128xf32>
    %226 = arith.addf %222, %225 : vector<8x128xf32>
    %c4_77 = arith.constant 4 : index
    %227 = memref.load %arg3[%c4_77] : memref<8xf32, #tpu.memory_space<smem>>
    %228 = vector.broadcast %227 : f32 to vector<8x128xf32>
    %229 = arith.addf %226, %228 : vector<8x128xf32>
    %cst_78 = arith.constant 0.000000e+00 : f32
    %230 = vector.broadcast %cst_78 : f32 to vector<8x128xf32>
    %231 = arith.maximumf %229, %230 : vector<8x128xf32>
    %c96 = arith.constant 96 : index
    %c0_79 = arith.constant 0 : index
    %232 = vector.load %arg7[%c96, %c0_79] : memref<128x128xf32, #tpu.memory_space<vmem>>, vector<8x128xf32>
    tpu.vector_store %arg7[%c96, %c0_79], %231 {strides = array<i32>} : memref<128x128xf32, #tpu.memory_space<vmem>>, vector<8x128xf32>,
    %c15_80 = arith.constant 15 : index
    %233 = memref.load %arg2[%c15_80] : memref<24xf32, #tpu.memory_space<smem>>
    %234 = vector.broadcast %233 : f32 to vector<8x128xf32>
    %235 = arith.mulf %143, %234 : vector<8x128xf32>
    %c16_81 = arith.constant 16 : index
    %236 = memref.load %arg2[%c16_81] : memref<24xf32, #tpu.memory_space<smem>>
    %237 = vector.broadcast %236 : f32 to vector<8x128xf32>
    %238 = arith.mulf %145, %237 : vector<8x128xf32>
    %239 = arith.addf %235, %238 : vector<8x128xf32>
    %c17_82 = arith.constant 17 : index
    %240 = memref.load %arg2[%c17_82] : memref<24xf32, #tpu.memory_space<smem>>
    %241 = vector.broadcast %240 : f32 to vector<8x128xf32>
    %242 = arith.mulf %147, %241 : vector<8x128xf32>
    %243 = arith.addf %239, %242 : vector<8x128xf32>
    %c5_83 = arith.constant 5 : index
    %244 = memref.load %arg3[%c5_83] : memref<8xf32, #tpu.memory_space<smem>>
    %245 = vector.broadcast %244 : f32 to vector<8x128xf32>
    %246 = arith.addf %243, %245 : vector<8x128xf32>
    %cst_84 = arith.constant 0.000000e+00 : f32
    %247 = vector.broadcast %cst_84 : f32 to vector<8x128xf32>
    %248 = arith.maximumf %246, %247 : vector<8x128xf32>
    %c104 = arith.constant 104 : index
    %c0_85 = arith.constant 0 : index
    %249 = vector.load %arg7[%c104, %c0_85] : memref<128x128xf32, #tpu.memory_space<vmem>>, vector<8x128xf32>
    tpu.vector_store %arg7[%c104, %c0_85], %248 {strides = array<i32>} : memref<128x128xf32, #tpu.memory_space<vmem>>, vector<8x128xf32>,
    %c18_86 = arith.constant 18 : index
    %250 = memref.load %arg2[%c18_86] : memref<24xf32, #tpu.memory_space<smem>>
    %251 = vector.broadcast %250 : f32 to vector<8x128xf32>
    %252 = arith.mulf %143, %251 : vector<8x128xf32>
    %c19_87 = arith.constant 19 : index
    %253 = memref.load %arg2[%c19_87] : memref<24xf32, #tpu.memory_space<smem>>
    %254 = vector.broadcast %253 : f32 to vector<8x128xf32>
    %255 = arith.mulf %145, %254 : vector<8x128xf32>
    %256 = arith.addf %252, %255 : vector<8x128xf32>
    %c20_88 = arith.constant 20 : index
    %257 = memref.load %arg2[%c20_88] : memref<24xf32, #tpu.memory_space<smem>>
    %258 = vector.broadcast %257 : f32 to vector<8x128xf32>
    %259 = arith.mulf %147, %258 : vector<8x128xf32>
    %260 = arith.addf %256, %259 : vector<8x128xf32>
    %c6_89 = arith.constant 6 : index
    %261 = memref.load %arg3[%c6_89] : memref<8xf32, #tpu.memory_space<smem>>
    %262 = vector.broadcast %261 : f32 to vector<8x128xf32>
    %263 = arith.addf %260, %262 : vector<8x128xf32>
    %cst_90 = arith.constant 0.000000e+00 : f32
    %264 = vector.broadcast %cst_90 : f32 to vector<8x128xf32>
    %265 = arith.maximumf %263, %264 : vector<8x128xf32>
    %c112 = arith.constant 112 : index
    %c0_91 = arith.constant 0 : index
    %266 = vector.load %arg7[%c112, %c0_91] : memref<128x128xf32, #tpu.memory_space<vmem>>, vector<8x128xf32>
    tpu.vector_store %arg7[%c112, %c0_91], %265 {strides = array<i32>} : memref<128x128xf32, #tpu.memory_space<vmem>>, vector<8x128xf32>,
    %c21_92 = arith.constant 21 : index
    %267 = memref.load %arg2[%c21_92] : memref<24xf32, #tpu.memory_space<smem>>
    %268 = vector.broadcast %267 : f32 to vector<8x128xf32>
    %269 = arith.mulf %143, %268 : vector<8x128xf32>
    %c22_93 = arith.constant 22 : index
    %270 = memref.load %arg2[%c22_93] : memref<24xf32, #tpu.memory_space<smem>>
    %271 = vector.broadcast %270 : f32 to vector<8x128xf32>
    %272 = arith.mulf %145, %271 : vector<8x128xf32>
    %273 = arith.addf %269, %272 : vector<8x128xf32>
    %c23_94 = arith.constant 23 : index
    %274 = memref.load %arg2[%c23_94] : memref<24xf32, #tpu.memory_space<smem>>
    %275 = vector.broadcast %274 : f32 to vector<8x128xf32>
    %276 = arith.mulf %147, %275 : vector<8x128xf32>
    %277 = arith.addf %273, %276 : vector<8x128xf32>
    %c7_95 = arith.constant 7 : index
    %278 = memref.load %arg3[%c7_95] : memref<8xf32, #tpu.memory_space<smem>>
    %279 = vector.broadcast %278 : f32 to vector<8x128xf32>
    %280 = arith.addf %277, %279 : vector<8x128xf32>
    %cst_96 = arith.constant 0.000000e+00 : f32
    %281 = vector.broadcast %cst_96 : f32 to vector<8x128xf32>
    %282 = arith.maximumf %280, %281 : vector<8x128xf32>
    %c120 = arith.constant 120 : index
    %c0_97 = arith.constant 0 : index
    %283 = vector.load %arg7[%c120, %c0_97] : memref<128x128xf32, #tpu.memory_space<vmem>>, vector<8x128xf32>
    tpu.vector_store %arg7[%c120, %c0_97], %282 {strides = array<i32>} : memref<128x128xf32, #tpu.memory_space<vmem>>, vector<8x128xf32>,
    %c0_98 = arith.constant 0 : index
    %c0_99 = arith.constant 0 : index
    %284 = vector.load %arg4[%c0_98, %c0_99] : memref<8x128xf32, #tpu.memory_space<vmem>>, vector<8x128xf32>
    %c0_100 = arith.constant 0 : index
    %c0_101 = arith.constant 0 : index
    %285 = vector.load %arg7[%c0_100, %c0_101] : memref<128x128xf32, #tpu.memory_space<vmem>>, vector<128x128xf32>
    %cst_102 = arith.constant dense<0.000000e+00> : vector<8x128xf32>
    %286 = tpu.matmul %284, %285, %cst_102 {dimension_numbers = #tpu.dot_dimension_numbers<[1], [1], [0], [0], [0, 0, 1, 0], [], []>} : vector<8x128xf32>, vector<128x128xf32>, vector<8x128xf32> -> vector<8x128xf32>
    %287 = tpu.iota {dimensions = array<i32: 0>} : vector<8x128xi32>
    %cst_103 = arith.constant 0.000000e+00 : f32
    %288 = vector.broadcast %cst_103 : f32 to vector<8x128xf32>
    %c0_i32 = arith.constant 0 : i32
    %289 = vector.broadcast %c0_i32 : i32 to vector<8x128xi32>
    %290 = arith.cmpi eq, %287, %289 : vector<8x128xi32>
    %c0_104 = arith.constant 0 : index
    %291 = memref.load %arg5[%c0_104] : memref<2xf32, #tpu.memory_space<smem>>
    %292 = vector.broadcast %291 : f32 to vector<8x128xf32>
    %293 = arith.select %290, %292, %288 : vector<8x128xi1>, vector<8x128xf32>
    %c1_i32 = arith.constant 1 : i32
    %294 = vector.broadcast %c1_i32 : i32 to vector<8x128xi32>
    %295 = arith.cmpi eq, %287, %294 : vector<8x128xi32>
    %c1_105 = arith.constant 1 : index
    %296 = memref.load %arg5[%c1_105] : memref<2xf32, #tpu.memory_space<smem>>
    %297 = vector.broadcast %296 : f32 to vector<8x128xf32>
    %298 = arith.select %295, %297, %293 : vector<8x128xi1>, vector<8x128xf32>
    %299 = arith.addf %286, %298 : vector<8x128xf32>
    %cst_106 = arith.constant 0.000000e+00 : f32
    %300 = vector.broadcast %cst_106 : f32 to vector<8x128xf32>
    %301 = arith.maximumf %299, %300 : vector<8x128xf32>
    %c0_107 = arith.constant 0 : index
    %c0_108 = arith.constant 0 : index
    %302 = vector.load %arg6[%c0_107, %c0_108] : memref<8x128xf32, #tpu.memory_space<vmem>>, vector<8x128xf32>
    tpu.vector_store %arg6[%c0_107, %c0_108], %301 {strides = array<i32>} : memref<8x128xf32, #tpu.memory_space<vmem>>, vector<8x128xf32>,
    return
  }
  func.func @transform_0(%arg0: i32) -> (i32, i32, i32, i32) {
    %c0_i32 = arith.constant 0 : i32
    %c0_i32_0 = arith.constant 0 : i32
    %c0_i32_1 = arith.constant 0 : i32
    %c0_i32_2 = arith.constant 0 : i32
    %c0_i32_3 = arith.constant 0 : i32
    return %c0_i32, %c0_i32_0, %c0_i32_1, %c0_i32_2 : i32, i32, i32, i32
  }
  func.func @transform_1(%arg0: i32) -> i32 {
    %c0_i32 = arith.constant 0 : i32
    %c0_i32_0 = arith.constant 0 : i32
    return %c0_i32 : i32
  }
  func.func @transform_2(%arg0: i32) -> i32 {
    %c0_i32 = arith.constant 0 : i32
    %c0_i32_0 = arith.constant 0 : i32
    return %c0_i32 : i32
  }
  func.func @transform_3(%arg0: i32) -> (i32, i32) {
    %c0_i32 = arith.constant 0 : i32
    %c0_i32_0 = arith.constant 0 : i32
    %c0_i32_1 = arith.constant 0 : i32
    return %c0_i32, %c0_i32_0 : i32, i32
  }
  func.func @transform_4(%arg0: i32) -> i32 {
    %c0_i32 = arith.constant 0 : i32
    %c0_i32_0 = arith.constant 0 : i32
    return %c0_i32 : i32
  }
  func.func @transform_5(%arg0: i32) -> (i32, i32) {
    %c0_i32 = arith.constant 0 : i32
    %c0_i32_0 = arith.constant 0 : i32
    %c0_i32_1 = arith.constant 0 : i32
    return %c0_i32, %c0_i32_0 : i32, i32
  }
}

</mosaic_0001>

<bundles_post_ra>
// kernel: model_forward.1
= control target key start
LH: loop header
LB: loop body
LE: loop exit
PB: predicated region body
PF: predicated region fallthrough
CT: control target
= control target key end

     0   :  { %s967_s0 = inlined_call_operand.vmem [shape: f32[2,3,8,128], index: 0, kind: input, shape index: {}]   ;;  %s968_s1 = inlined_call_operand.vmem [shape: f32[24], index: 1, kind: input, shape index: {}]   ;;  %s969_s2 = inlined_call_operand.vmem [shape: f32[8], index: 2, kind: input, shape index: {}]   ;;  %s970_s3 = inlined_call_operand.vmem [shape: f32[8,128], index: 3, kind: input, shape index: {}]   ;;  %s971_s4 = inlined_call_operand.vmem [shape: f32[2], index: 4, kind: input, shape index: {}]   ;;  %s972_s5 = inlined_call_operand.vmem [shape: f32[8,128], index: 5, kind: output, shape index: {}]  }
   0x1   :  { %979 = sst [smem:[#allocation16_spill]] %s970_s3 }
   0x2   :  { %980 = sst [smem:[#allocation17_spill]] %s972_s5 }
   0x3   :  { %10 = vsyncpa [#allocation4], 0 }
   0x4   :  { %11 = vsyncpa [#allocation6], 0  ;;  %s30_s20 = sshll.u32 %s969_s2, 4  ;;  %s20_s23 = sshll.u32 %s968_s1, 4  ;;  %s31_s20 = int_to_ptr.vmem [resolvable:$true] %s30_s20  ;;  %s21_s23 = int_to_ptr.vmem [resolvable:$true] %s20_s23 }
   0x5   :  { %s576_s24 = scalar_lea.vmem %s31_s20, 16  ;;  %p581_p1 = scmp.lt.s32.totalorder %s31_s20, %s31_s20 }
   0x6   :  { %p577_p0 = scmp.ne.s32.totalorder %s31_s20, %s576_s24  ;;  %p582_p2 = scmp.lt.s32.totalorder %s576_s24, %s576_s24 }
   0x8   :  { %p583_p3 = por %p582_p2, %p581_p1 }
   0xa   :  { %p584_p4 = pnand %p583_p3, %p577_p0 }
   0xc   :  { %587 = shalt.err (!%p584_p4)
}
   0xd   :  { %s616_s25 = smov [#allocation5]   ;;  %s588_s26 = scalar_lea.vmem %s21_s23, 16 }
   0xe   :  { %33 = dma.vmem_to_smem %s31_s20, 16, %s616_s25, [#allocation6]  }
   0xf   :  { %p589_p5 = scmp.ne.s32.totalorder %s21_s23, %s588_s26  ;;  %p593_p6 = scmp.lt.s32.totalorder %s21_s23, %s21_s23 }
  0x10   :  { %p594_p7 = scmp.lt.s32.totalorder %s588_s26, %s588_s26 }
  0x12   :  { %p595_p8 = por %p594_p7, %p593_p6 }
  0x14   :  { %p596_p9 = pnand %p595_p8, %p589_p5 }
  0x16   :  { %599 = shalt.err (!%p596_p9)
}
  0x17   :  { %s617_s2 = smov [#allocation3]   ;;  %s42_s28 = sshll.u32 %s971_s4, 4  ;;  %s43_s28 = int_to_ptr.vmem [resolvable:$true] %s42_s28 }
  0x18   :  { %23 = dma.vmem_to_smem %s21_s23, 16, %s617_s2, [#allocation4]  }
  0x19   :  { %s600_s29 = scalar_lea.vmem %s43_s28, 16  ;;  %p605_p11 = scmp.lt.s32.totalorder %s43_s28, %s43_s28 }
  0x1a   :  { %p601_p10 = scmp.ne.s32.totalorder %s43_s28, %s600_s29  ;;  %p606_p12 = scmp.lt.s32.totalorder %s600_s29, %s600_s29 }
  0x1c   :  { %p607_p13 = por %p606_p12, %p605_p11 }
  0x1e   :  { %p608_p0 = pnand %p607_p13, %p601_p10 }
  0x20   :  { %611 = shalt.err (!%p608_p0)
}
  0x21   :  { %s618_s30 = smov [#allocation7]  }
  0x22   :  { %45 = dma.vmem_to_smem %s43_s28, 16, %s618_s30, [#allocation6]  }
  0x23   :  { %612 = dma.done.wait [#allocation4], 16  }
  0x24   :  { %613 = vsyncadd [#allocation4], 4294967280 }
  0x25   :  { %614 = dma.done.wait [#allocation6], 32  }
  0x26   :  { %615 = vsyncadd [#allocation6], 4294967264 }
  0x27   :  { %55 = sfence }
  0x28   :  { %s661_s6 = sld [smem:[#allocation3]]  ;;  %v619_v0 = vmov 0.0|0.0   ;;  %s664_s4 = sld [smem:[#allocation3 + $0x1]]  ;;  %v679_v1 = vld [vmem:[%s967_s0] sm:$0xff]  ;;  %vm620_vm0 = vmmov 0   ;;  %v621_v2 = vmov 0.0  }
  0x29   :  { %546 = vmatprep.subr.bf16.mxu0 %v619_v0  ;;  %s666_s7 = sld [smem:[#allocation3 + $0x2]]  ;;  %s668_s8 = sld [smem:[#allocation5]]  ;;  %543 = vmatprep.mubr.msk.f32.mxu0 %vm620_vm0, %v621_v2  ;;  %v688_v3 = vld [vmem:[%s967_s0 + $0x8] sm:$0xff]  ;;  %v693_v4 = vld [vmem:[%s967_s0 + $0x10] sm:$0xff] }
  0x2a   :  { %s670_s9 = sld [smem:[#allocation3 + $0x3]]  ;;  %s672_s10 = sld [smem:[#allocation3 + $0x4]] }
  0x2b   :  { %s674_s11 = sld [smem:[#allocation3 + $0x5]]  ;;  %s681_s14 = sld [smem:[#allocation5 + $0x1]] }
  0x2c   :  { %s683_s15 = sld [smem:[#allocation3 + $0x6]]  ;;  %s695_s20 = sld [smem:[#allocation3 + $0x7]] }
  0x2d   :  { %s697_s21 = sld [smem:[#allocation3 + $0x8]]  ;;  %s700_s22 = sld [smem:[#allocation5 + $0x2]] }
  0x2e   :  { %v62_v5 = vstv %s661_s6  ;;  %s702_s23 = sld [smem:[#allocation3 + $0x9]]  ;;  %v65_v7 = vstv %s664_s4  ;;  %s709_s24 = sld [smem:[#allocation3 + $0xa]] }
  0x2f   :  { %v63_v6 = vmul.f32 %v62_v5, %v679_v1  ;;  %v69_v8 = vstv %s666_s7  ;;  %s711_s25 = sld [smem:[#allocation3 + $0xb]]  ;;  %v66_v9 = vmul.f32 %v688_v3, %v65_v7  ;;  %s722_s2 = sld [smem:[#allocation3 + $0xc]]  ;;  %v73_v16 = vstv %s668_s8 }
  0x30   :  { %v70_v10 = vmul.f32 %v693_v4, %v69_v8  ;;  %v78_v11 = vstv %s670_s9  ;;  %s720_s26 = sld [smem:[#allocation5 + $0x3]]  ;;  %v81_v13 = vstv %s672_s10  ;;  %s729_s1 = sld [smem:[#allocation3 + $0xd]] }
  0x31   :  { %v79_v12 = vmul.f32 %v78_v11, %v679_v1  ;;  %v85_v14 = vstv %s674_s11  ;;  %s731_s27 = sld [smem:[#allocation3 + $0xe]]  ;;  %v67_v15 = vadd.f32 %v66_v9, %v63_v6  ;;  %v82_v17 = vmul.f32 %v688_v3, %v81_v13  ;;  %s744_s28 = sld [smem:[#allocation3 + $0xf]] }
  0x32   :  { %v86_v18 = vmul.f32 %v693_v4, %v85_v14  ;;  %v89_v19 = vstv %s681_s14  ;;  %v94_v20 = vstv %s683_s15  ;;  %v97_v21 = vstv %s695_s20  ;;  %s746_s29 = sld [smem:[#allocation3 + $0x10]]  ;;  %s754_s30 = sld [smem:[#allocation5 + $0x4]] }
  0x33   :  { %v101_v22 = vstv %s697_s21  ;;  %v71_v23 = vadd.f32 %v70_v10, %v67_v15  ;;  %v83_v24 = vadd.f32 %v82_v17, %v79_v12  ;;  %v95_v25 = vmul.f32 %v94_v20, %v679_v1  ;;  %s762_s12 = sld [smem:[#allocation3 + $0x11]]  ;;  %s769_s13 = sld [smem:[#allocation3 + $0x12]] }
  0x34   :  { %v98_v26 = vmul.f32 %v688_v3, %v97_v21  ;;  %v102_v27 = vmul.f32 %v693_v4, %v101_v22  ;;  %v105_v28 = vstv %s700_s22  ;;  %v110_v29 = vstv %s702_s23  ;;  %s771_s16 = sld [smem:[#allocation3 + $0x13]]  ;;  %s779_s17 = sld [smem:[#allocation5 + $0x5]] }
  0x35   :  { %v113_v30 = vstv %s709_s24  ;;  %v74_v31 = vadd.f32 %v73_v16, %v71_v23  ;;  %v87_v32 = vadd.f32 %v86_v18, %v83_v24  ;;  %v111_v34 = vmul.f32 %v110_v29, %v679_v1  ;;  %s786_s18 = sld [smem:[#allocation3 + $0x14]]  ;;  %s788_s19 = sld [smem:[#allocation3 + $0x15]] }
  0x36   :  { %981 = sst [smem:[#allocation10_spill]] %s720_s26  ;;  %v99_v33 = vadd.f32 %v98_v26, %v95_v25  ;;  %v114_v35 = vmul.f32 %v688_v3, %v113_v30  ;;  %v117_v36 = vstv %s711_s25  ;;  %v121_v37 = vstv %s720_s26  ;;  %s803_s5 = sld [smem:[#allocation3 + $0x16]] }
  0x37   :  { %982 = sst [smem:[#allocation11_spill]] %s731_s27  ;;  %v126_v38 = vstv %s722_s2  ;;  %v75_v39 = vmax.f32 %v74_v31, 0.0  ;;  %v90_v40 = vadd.f32 %v89_v19, %v87_v32  ;;  %v118_v42 = vmul.f32 %v693_v4, %v117_v36  ;;  %s805_s3 = sld [smem:[#allocation3 + $0x17]]  ;;  %v846_v31 = vld [vmem:[%s967_s0 + $0x18] sm:$0xff] }
  0x38   :  { %983 = sst [smem:[#allocation12_spill]] %s754_s30  ;;  %v103_v41 = vadd.f32 %v102_v27, %v99_v33  ;;  %v115_v43 = vadd.f32 %v114_v35, %v111_v34  ;;  %v127_v44 = vmul.f32 %v126_v38, %v679_v1  ;;  %v129_v45 = vstv %s729_s1  ;;  %s993_s10 = sld [smem:[#allocation16_spill]] }
  0x39   :  { %984 = sst [smem:[#allocation13_spill]] %s762_s12  ;;  %v133_v46 = vstv %s731_s27  ;;  %v91_v47 = vmax.f32 %v90_v40, 0.0  ;;  %v130_v49 = vmul.f32 %v688_v3, %v129_v45  ;;  %v142_v52 = vstv %s744_s28  ;;  %s819_s27 = sld [smem:[#allocation5 + $0x6]] }
  0x3a   :  { %985 = sst [smem:[#allocation14_spill]] %s769_s13  ;;  %v106_v48 = vadd.f32 %v105_v28, %v103_v41  ;;  %v134_v50 = vmul.f32 %v693_v4, %v133_v46  ;;  %v119_v51 = vadd.f32 %v118_v42, %v115_v43  ;;  %v145_v53 = vstv %s746_s29  ;;  %s343_s11 = sld [smem:[#allocation7]] }
  0x3b   :  { %986 = sst [smem:[#allocation15_spill]] %s771_s16  ;;  %v547_v54 = vpack.c.bf16 %v91_v47, %v75_v39  ;;  %v131_v55 = vadd.f32 %v130_v49, %v127_v44  ;;  %v137_v56 = vstv %s754_s30  ;;  %v143_v57 = vmul.f32 %v142_v52, %v679_v1  ;;  %v856_v39 = vld [vmem:[%s967_s0 + $0x20] sm:$0xff]  ;;  %s493_s14 = sld [smem:[#allocation7 + $0x1]] }
  0x3c   :  { %v107_v58 = vmax.f32 %v106_v48, 0.0  ;;  %v122_v59 = vadd.f32 %v121_v37, %v119_v51  ;;  %v146_v60 = vmul.f32 %v688_v3, %v145_v53  ;;  %v149_v61 = vstv %s762_s12  ;;  %s833_s12 = sld [smem:[#allocation5 + $0x7]] }
  0x3d   :  { %548 = vmatpush3.bf16.xpose.msra.mxu0 %v547_v54  ;;  %v135_v62 = vadd.f32 %v134_v50, %v131_v55  ;;  %v150_v63 = vmul.f32 %v693_v4, %v149_v61  ;;  %v158_v2 = vstv %s769_s13  ;;  %v161_v6 = vstv %s771_s16  ;;  %s994_s21 = sld [smem:[#allocation17_spill]] }
  0x3e   :  { %549 = vmatprep.subr.bf16.mxu0 %v619_v0  ;;  %v123_v9 = vmax.f32 %v122_v59, 0.0  ;;  %v147_v10 = vadd.f32 %v146_v60, %v143_v57  ;;  %v159_v12 = vmul.f32 %v158_v2, %v679_v1  ;;  %v162_v15 = vmul.f32 %v688_v3, %v161_v6 }
  0x3f   :  { %v153_v17 = vstv %s779_s17  ;;  %v165_v18 = vstv %s786_s18  ;;  %v174_v23 = vstv %s788_s19  ;;  %v138_v24 = vadd.f32 %v137_v56, %v135_v62 }
  0x40   :  { %v151_v25 = vadd.f32 %v150_v63, %v147_v10  ;;  %v163_v26 = vadd.f32 %v162_v15, %v159_v12  ;;  %v166_v27 = vmul.f32 %v693_v4, %v165_v18  ;;  %v550_v32 = vpack.c.bf16 %v123_v9, %v107_v58 }
  0x41   :  { %v175_v33 = vmul.f32 %v174_v23, %v679_v1  ;;  %v177_v34 = vstv %s803_s5  ;;  %v181_v35 = vstv %s805_s3  ;;  %v197_v1 = vmul.f32 %v846_v31, %v62_v5 }
  0x42   :  { %v154_v40 = vadd.f32 %v153_v17, %v151_v25  ;;  %v178_v41 = vmul.f32 %v688_v3, %v177_v34  ;;  %v182_v42 = vmul.f32 %v693_v4, %v181_v35  ;;  %v167_v43 = vadd.f32 %v166_v27, %v163_v26  ;;  %v462_v3 = vld [vmem:[%s967_s0 + $0x28] sm:$0xff] }
  0x43   :  { %v169_v44 = vstv %s819_s27  ;;  %v200_v48 = vmul.f32 %v856_v39, %v65_v7  ;;  %v139_v49 = vmax.f32 %v138_v24, 0.0  ;;  %v213_v4 = vmul.f32 %v846_v31, %v78_v11 }
  0x44   :  { %v179_v47 = vadd.f32 %v178_v41, %v175_v33  ;;  %v155_v50 = vmax.f32 %v154_v40, 0.0  ;;  %v216_v5 = vmul.f32 %v856_v39, %v81_v13  ;;  %v185_v7 = vstv %s833_s12 }
  0x45   :  { %551 = vmatpush3.bf16.xpose.msra.mxu0 %v550_v32  ;;  %v170_v54 = vadd.f32 %v169_v44, %v167_v43  ;;  %v201_v55 = vadd.f32 %v200_v48, %v197_v1  ;;  %v204_v57 = vmul.f32 %v462_v3, %v69_v8  ;;  %v220_v13 = vmul.f32 %v462_v3, %v85_v14 }
  0x46   :  { %552 = vmatprep.subr.bf16.mxu0 %v619_v0  ;;  %v183_v51 = vadd.f32 %v182_v42, %v179_v47  ;;  %v553_v58 = vpack.c.bf16 %v155_v50, %v139_v49  ;;  %v217_v11 = vadd.f32 %v216_v5, %v213_v4  ;;  %v229_v63 = vmul.f32 %v846_v31, %v94_v20 }
  0x47   :  { %v171_v60 = vmax.f32 %v170_v54, 0.0  ;;  %v205_v62 = vadd.f32 %v204_v57, %v201_v55  ;;  %v232_v9 = vmul.f32 %v856_v39, %v97_v21  ;;  %v245_v12 = vmul.f32 %v846_v31, %v110_v29 }
  0x48   :  { %v186_v59 = vadd.f32 %v185_v7, %v183_v51  ;;  %v221_v10 = vadd.f32 %v220_v13, %v217_v11  ;;  %v248_v14 = vmul.f32 %v856_v39, %v113_v30  ;;  %v236_v21 = vmul.f32 %v462_v3, %v101_v22 }
  0x49   :  { %v208_v20 = vadd.f32 %v205_v62, %v73_v16  ;;  %v233_v15 = vadd.f32 %v232_v9, %v229_v63  ;;  %v252_v29 = vmul.f32 %v462_v3, %v117_v36  ;;  %v261_v32 = vmul.f32 %v846_v31, %v126_v38 }
  0x4a   :  { %v187_v8 = vmax.f32 %v186_v59, 0.0  ;;  %v224_v25 = vadd.f32 %v221_v10, %v89_v19  ;;  %v249_v26 = vadd.f32 %v248_v14, %v245_v12  ;;  %v264_v16 = vmul.f32 %v856_v39, %v129_v45 }
  0x4b   :  { %v209_v27 = vmax.f32 %v208_v20, 0.0  ;;  %v237_v30 = vadd.f32 %v236_v21, %v233_v15  ;;  %v277_v19 = vmul.f32 %v846_v31, %v142_v52  ;;  %v280_v36 = vmul.f32 %v856_v39, %v145_v53 }
  0x4c   :  { %v556_v24 = vpack.c.bf16 %v187_v8, %v171_v60  ;;  %v225_v22 = vmax.f32 %v224_v25, 0.0  ;;  %v253_v33 = vadd.f32 %v252_v29, %v249_v26  ;;  %v265_v40 = vadd.f32 %v264_v16, %v261_v32 }
  0x4d   :  { %554 = vmatpush3.bf16.xpose.msra.mxu0 %v553_v58  ;;  %v240_v38 = vadd.f32 %v237_v30, %v105_v28  ;;  %v268_v45 = vmul.f32 %v462_v3, %v133_v46  ;;  %v281_v1 = vadd.f32 %v280_v36, %v277_v19  ;;  %v284_v52 = vmul.f32 %v462_v3, %v149_v61 }
  0x4e   :  { %555 = vmatprep.subr.bf16.mxu0 %v619_v0  ;;  %v559_v41 = vpack.c.bf16 %v225_v22, %v209_v27  ;;  %v256_v42 = vadd.f32 %v253_v33, %v121_v37  ;;  %v293_v47 = vmul.f32 %v846_v31, %v158_v2  ;;  %v296_v28 = vmul.f32 %v856_v39, %v161_v6 }
  0x4f   :  { %v241_v53 = vmax.f32 %v240_v38, 0.0  ;;  %v269_v43 = vadd.f32 %v268_v45, %v265_v40  ;;  %v285_v46 = vadd.f32 %v284_v52, %v281_v1  ;;  %v309_v49 = vmul.f32 %v846_v31, %v174_v23 }
  0x50   :  { %v257_v48 = vmax.f32 %v256_v42, 0.0  ;;  %v312_v37 = vmul.f32 %v856_v39, %v177_v34  ;;  %v300_v2 = vmul.f32 %v462_v3, %v165_v18  ;;  %v316_v50 = vmul.f32 %v462_v3, %v181_v35  ;;  %v323_v3 = vld [vmem:[%s993_s10] sm:$0xff] }
  0x51   :  { %v272_v61 = vadd.f32 %v269_v43, %v137_v56  ;;  %v288_v4 = vadd.f32 %v285_v46, %v153_v17  ;;  %v297_v5 = vadd.f32 %v296_v28, %v293_v47  ;;  %v340_v57 = vlaneseq }
  0x52   :  { %v562_v6 = vpack.c.bf16 %v257_v48, %v241_v53  ;;  %v313_v51 = vadd.f32 %v312_v37, %v309_v49 }
  0x53   :  { %v273_v23 = vmax.f32 %v272_v61, 0.0  ;;  %v289_v31 = vmax.f32 %v288_v4, 0.0  ;;  %v301_v54 = vadd.f32 %v300_v2, %v297_v5  ;;  %v341_v58 = vshrl.u32 %v340_v57, 7 }
  0x54   :  { %v317_v34 = vadd.f32 %v316_v50, %v313_v51 }
  0x55   :  { %557 = vmatpush3.bf16.xpose.msra.mxu0 %v556_v24  ;;  %v565_v39 = vpack.c.bf16 %v289_v31, %v273_v23  ;;  %v304_v55 = vadd.f32 %v301_v54, %v169_v44  ;;  %vm342_vm1 = vcmp.eq.s32.totalorder %v341_v58, 0  ;;  %v344_v44 = vstv %s343_s11 }
  0x56   :  { %558 = vmatprep.subr.bf16.mxu0 %v619_v0  ;;  %v320_v56 = vadd.f32 %v317_v34, %v185_v7  ;;  %v345_v59 = vsel %vm342_vm1, %v344_v44, 0.0  ;;  %vm346_vm2 = vcmp.eq.s32.totalorder %v341_v58, 1  ;;  %v348_v7 = vstv %s493_s14 }
  0x57   :  { %v305_v18 = vmax.f32 %v304_v55, 0.0  ;;  %v349_v11 = vsel %vm346_vm2, %v348_v7, %v345_v59 }
  0x58   :  { %v321_v35 = vmax.f32 %v320_v56, 0.0 }
  0x5a   :  { %v568_v17 = vpack.c.bf16 %v321_v35, %v305_v18 }
  0x5d   :  { %560 = vmatpush3.bf16.xpose.msra.mxu0 %v559_v41 }
  0x5e   :  { %561 = vmatprep.subr.bf16.mxu0 %v619_v0 }
  0x65   :  { %563 = vmatpush3.bf16.xpose.msra.mxu0 %v562_v6 }
  0x66   :  { %564 = vmatprep.subr.bf16.mxu0 %v619_v0 }
  0x6d   :  { %566 = vmatpush3.bf16.xpose.msra.mxu0 %v565_v39 }
  0x6e   :  { %567 = vmatprep.subr.bf16.mxu0 %v619_v0 }
  0x75   :  { %569 = vmatpush3.bf16.xpose.msra.mxu0 %v568_v17 }
  0x7c   :  { %544 = vmatmul.mubr.f32.vlgmr.msra.gmra.mrb[0].mxu0 %v323_v3 }
 0x14f   :  { %v416_v13 = vpop.f32.mrb[0].mxu0 }
 0x150   :  { %v417_v60 = vadd.f32 %v416_v13, %v349_v11  ;;  %v545_v0 = vpop.f32.mrb[1].mxu0 }
 0x152   :  { %v420_v62 = vmax.f32 %v417_v60, 0.0 }
 0x154   :  { %421 = vst [vmem:[%s994_s21] sm:$0xff] %v420_v62 }
 0x155   :  { %426 = vsyncpa [#allocation4], 1 }
 0x156   :  { %427 = vsyncpa [#allocation6], 1 }

</bundles_post_ra>
